<compile_context>
chip_gen: v7x
topology: tpu7x:2x2x1
jax: 0.10.0
libtpu: 0.0.40
codegen_flags: <defaults>
</compile_context>

<pallas_src>
import functools

import jax
import jax.numpy as jnp
import numpy as np
from jax.experimental import pallas as pl
from jax.experimental.pallas import tpu as pltpu

C_NUM = 2
O_CHANNEL = 4
BN_EPS = 1e-5

_VMEM = pl.BlockSpec(memory_space=pltpu.MemorySpace.VMEM)


# ---------------------------------------------------------------------------
# Single fused kernel: c_num x (conv3x3 + BN + ReLU) + residual + 2x2/stride-2
# conv + ReLU.  Everything stays in vregs.
# ---------------------------------------------------------------------------
def fused_ds_kernel(x_ref, wf_ref, cb_ref, gm_ref, bt_ref, wds_ref, dsb_ref,
                    o_ref, *, hp, c):
    # x_ref   : (M, L) = (N*H/2, 2*W*C)   packed-pair lane-folded input
    # wf_ref  : (c_num, 3L, L)            fused [prev | same | next] conv weights
    # cb_ref  : (c_num, 1, L)             conv bias tiled onto lanes
    # gm_ref  : (c_num, 1, L)             BN gamma tiled onto lanes
    # bt_ref  : (c_num, 1, L)             BN beta tiled onto lanes
    # wds_ref : (L, W2*C)                 downsample (k=2, stride=2) lane weight
    # dsb_ref : (1, W2*C)                 downsample bias tiled onto lanes
    # o_ref   : (M, W2*C) = (N*H/2, (W/2)*C)
    m, l = x_ref.shape
    c_num = wf_ref.shape[0]
    inv_cnt = float(c) / float(m * l)              # 1 / (N*H*W) per-channel count

    x0 = x_ref[...]
    x_cur = x0

    # Packed-row neighbour masks (H 'same' zero padding + batch boundaries).
    # Hoisted out of the block loop (broadcasts are not CSE'd by JAX).
    row = jax.lax.broadcasted_iota(jnp.int32, (m, l), 0)
    is_first = (row % hp) == 0                     # packed row r == 0     (per batch)
    is_last = (row % hp) == (hp - 1)               # packed row r == Hp-1  (per batch)

    for i in range(c_num):
        # ---- conv3x3 (SAME): ONE matmul per block --------------------------
        # x_prev[m] = X[m-1] (zero at the top H boundary of each batch element)
        # x_next[m] = X[m+1] (zero at the bottom H boundary)
        x_prev = jnp.where(is_first, 0.0, pltpu.roll(x_cur, 1, axis=0))
        x_next = jnp.where(is_last, 0.0, pltpu.roll(x_cur, m - 1, axis=0))
        x_cat = jnp.concatenate([x_prev, x_cur, x_next], axis=1)      # (M, 3L)
        acc = jnp.dot(x_cat, wf_ref[i], preferred_element_type=jnp.float32)
        acc = acc + cb_ref[i]                                          # conv bias

        # ---- BatchNorm (training-mode batch stats), no MXU ------------------
        # Sublane sum, then a log-tree of lane rolls over the channel-stride:
        # afterwards EVERY lane holds its own channel's total, so the
        # per-channel broadcast back is free.
        s1 = jnp.sum(acc, axis=0, keepdims=True)                       # (1, L)
        s2 = jnp.sum(acc * acc, axis=0, keepdims=True)                 # (1, L)
        sh = l // 2
        while sh >= c:
            s1 = s1 + pltpu.roll(s1, sh, axis=1)
            s2 = s2 + pltpu.roll(s2, sh, axis=1)
            sh //= 2
        mean = s1 * inv_cnt
        var = s2 * inv_cnt - mean * mean                               # biased var
        scale = gm_ref[i] * jax.lax.rsqrt(var + BN_EPS)
        shift = bt_ref[i] - mean * scale
        x_cur = jnp.maximum(acc * scale + shift, 0.0)                  # BN affine + ReLU

    # ---- residual add + conv2d(k=2, stride=2) + ReLU: ONE matmul ------------
    # Each packed row already holds both H rows feeding one output row, so the
    # whole downsample conv is y @ Wds with K = L = 128 (one full lane width).
    y = x_cur + x0
    out = jnp.dot(y, wds_ref[...], preferred_element_type=jnp.float32)
    o_ref[...] = jnp.maximum(out + dsb_ref[...], 0.0)


# ---------------------------------------------------------------------------
# Parameter plumbing (done once, outside the per-call path)
# ---------------------------------------------------------------------------
def init_params(key, c_num=C_NUM, c=O_CHANNEL):
    """Conv weights are (kh, kw, cin, cout); real PyTorch Conv2d weights
    (cout, cin, kh, kw) must be permuted with transpose(2, 3, 1, 0)."""
    params = {"conv_w": [], "conv_b": [], "bn_g": [], "bn_b": []}
    keys = jax.random.split(key, 2 * c_num + 2)
    for i in range(c_num):
        params["conv_w"].append(
            0.1 * jax.random.normal(keys[2 * i], (3, 3, c, c), jnp.float32))
        params["conv_b"].append(
            0.05 * jax.random.normal(keys[2 * i + 1], (c,), jnp.float32))
        params["bn_g"].append(jnp.ones((c,), jnp.float32) + 0.01 * i)
        params["bn_b"].append(jnp.full((c,), 0.02 * i, jnp.float32))
    params["ds_w"] = 0.1 * jax.random.normal(keys[-2], (2, 2, c, c), jnp.float32)
    params["ds_b"] = 0.05 * jax.random.normal(keys[-1], (c,), jnp.float32)
    return params


def prepare_params(params, w):
    """Fold the kh/kw taps + cin->cout mix into lane-space weights for the
    packed-pair (M, 2*W*C) layout.  Host-side, once."""
    c = int(params["ds_b"].shape[0])
    c_num = len(params["conv_w"])
    wc = w * c                        # 64
    l = 2 * wc                        # 128
    w2 = w // 2

    def s_kh(wi, kh):
        # S[(w_in*C+ci), (w_out*C+co)] = wi[kh, kw, ci, co] with kw = w_in-w_out+1
        # (out-of-range w_in is simply absent -> zero 'same' padding in W).
        s = np.zeros((wc, wc), np.float32)
        wnp = np.asarray(wi)
        for kw in range(3):
            shift = np.eye(w, k=1 - kw, dtype=np.float32)
            s += np.kron(shift, wnp[kh, kw])
        return s

    wf_list, cb_list, gm_list, bt_list = [], [], [], []
    for i in range(c_num):
        s0, s1, s2 = (s_kh(params["conv_w"][i], kh) for kh in range(3))
        # Fused weight rows: [ prev packed row | same packed row | next packed row ]
        # Output lanes: cols 0:wc = orig row 2r, cols wc:l = orig row 2r+1.
        wf = np.zeros((3 * l, l), np.float32)
        wf[wc:l, 0:wc] = s0                    # prev half1 (row 2r-1) -> out row 2r
        wf[l:l + wc, 0:wc] = s1                # same half0 (row 2r)   -> out row 2r
        wf[l + wc:2 * l, 0:wc] = s2            # same half1 (row 2r+1) -> out row 2r
        wf[l:l + wc, wc:l] = s0                # same half0 (row 2r)   -> out row 2r+1
        wf[l + wc:2 * l, wc:l] = s1            # same half1 (row 2r+1) -> out row 2r+1
        wf[2 * l:2 * l + wc, wc:l] = s2        # next half0 (row 2r+2) -> out row 2r+1
        wf_list.append(wf)
        cb_list.append(np.tile(np.asarray(params["conv_b"][i]), 2 * w).reshape(1, l))
        gm_list.append(np.tile(np.asarray(params["bn_g"][i]), 2 * w).reshape(1, l))
        bt_list.append(np.tile(np.asarray(params["bn_b"][i]), 2 * w).reshape(1, l))

    # 2x2 / stride-2 conv: both kh taps live inside one packed row.
    dsw = np.asarray(params["ds_w"])                        # (2, 2, C, C)
    wds = np.zeros((l, w2 * c), np.float32)
    for a in range(2):
        for b in range(2):
            p = np.zeros((2 * w, w2), np.float32)
            p[a * w + 2 * np.arange(w2) + b, np.arange(w2)] = 1.0   # w_in == 2*w2 + b
            wds += np.kron(p, dsw[a, b])
    dsb = np.tile(np.asarray(params["ds_b"]), w2).reshape(1, w2 * c)

    return {
        "wf": jnp.asarray(np.stack(wf_list)),               # (c_num, 3L, L)
        "cb": jnp.asarray(np.stack(cb_list)),               # (c_num, 1, L)
        "gm": jnp.asarray(np.stack(gm_list)),               # (c_num, 1, L)
        "bt": jnp.asarray(np.stack(bt_list)),               # (c_num, 1, L)
        "wds": jnp.asarray(wds),                            # (L, W2*C)
        "dsb": jnp.asarray(dsb),                            # (1, W2*C)
    }


# ---------------------------------------------------------------------------
# Forward wrapper (layout conversion at the boundary only)
# ---------------------------------------------------------------------------
@jax.jit
def ds_forward(x_nchw, prep):
    n, c, h, w = x_nchw.shape
    hp, w2 = h // 2, w // 2
    l = 2 * w * c
    # NCHW -> packed-pair lane-folded layout (N*H/2, 2*W*C): one transpose, then
    # the fold is a pure (free) reshape.
    x = jnp.transpose(x_nchw, (0, 2, 3, 1)).astype(jnp.float32).reshape(n * hp, l)

    kernel = functools.partial(fused_ds_kernel, hp=hp, c=c)
    out = pl.pallas_call(
        kernel,
        out_shape=jax.ShapeDtypeStruct((n * hp, w2 * c), jnp.float32),
        in_specs=[_VMEM] * 7,
        out_specs=_VMEM,
    )(x, prep["wf"], prep["cb"], prep["gm"], prep["bt"], prep["wds"], prep["dsb"])

    # (N*H2, W2*C) -> NCHW
    return jnp.transpose(out.reshape(n, hp, w2, c), (0, 3, 1, 2))


# Pure-JAX reference (same math, standard XLA convs) used for self-check.
@jax.jit
def ds_forward_reference(x_nchw, params):
    hp = jax.lax.Precision.HIGHEST
    x = jnp.transpose(x_nchw, (0, 2, 3, 1)).astype(jnp.float32)   # NHWC
    x_in = x
    for i in range(len(params["conv_w"])):
        y = jax.lax.conv_general_dilated(
            x, params["conv_w"][i], window_strides=(1, 1), padding="SAME",
            dimension_numbers=("NHWC", "HWIO", "NHWC"), precision=hp)
        y = y + params["conv_b"][i]
        mean = jnp.mean(y, axis=(0, 1, 2))
        var = jnp.mean((y - mean) ** 2, axis=(0, 1, 2))
        y = (y - mean) * jax.lax.rsqrt(var + BN_EPS)
        x = jnp.maximum(y * params["bn_g"][i] + params["bn_b"][i], 0.0)
    x = x + x_in
    y = jax.lax.conv_general_dilated(
        x, params["ds_w"], window_strides=(2, 2), padding="VALID",
        dimension_numbers=("NHWC", "HWIO", "NHWC"), precision=hp)
    y = jnp.maximum(y + params["ds_b"], 0.0)
    return jnp.transpose(y, (0, 3, 1, 2))


if __name__ == "__main__":
    key = jax.random.PRNGKey(0)
    k_x, k_p = jax.random.split(key)
    x = jax.random.normal(k_x, (2, O_CHANNEL, 16, 16), jnp.float32)  # NCHW
    params = init_params(k_p)
    prep = prepare_params(params, w=16)

    out = ds_forward(x, prep)
    jax.block_until_ready(out)
    assert out.shape == (2, O_CHANNEL, 8, 8), out.shape

    ref = ds_forward_reference(x, params)
    rel_err = float(jnp.linalg.norm(out - ref) / (jnp.linalg.norm(ref) + 1e-12))
    assert rel_err < 3e-2, f"relative error vs reference too large: {rel_err}"

    print("KERNEL_OK")
</pallas_src>

<mosaic_0001>
module attributes {stable_mosaic.version = 11 : i64} {
  func.func @fused_ds_kernel(%arg0: memref<16x128xf32, #tpu.memory_space<vmem>>, %arg1: memref<2x384x128xf32, #tpu.memory_space<vmem>>, %arg2: memref<2x1x128xf32, #tpu.memory_space<vmem>>, %arg3: memref<2x1x128xf32, #tpu.memory_space<vmem>>, %arg4: memref<2x1x128xf32, #tpu.memory_space<vmem>>, %arg5: memref<128x32xf32, #tpu.memory_space<vmem>>, %arg6: memref<1x32xf32, #tpu.memory_space<vmem>>, %arg7: memref<16x32xf32, #tpu.memory_space<vmem>>) attributes {dimension_semantics = [], scalar_prefetch = 0 : i64, scratch_operands = 0 : i64, tpu.core_type = #tpu.core_type<tc>} {
    %c0 = arith.constant 0 : index
    %c0_0 = arith.constant 0 : index
    %0 = vector.load %arg0[%c0, %c0_0] : memref<16x128xf32, #tpu.memory_space<vmem>>, vector<16x128xf32>
    %1 = tpu.iota {dimensions = array<i32: 0>} : vector<16x128xi32>
    %c8_i32 = arith.constant 8 : i32
    %c0_i32 = arith.constant 0 : i32
    %2 = arith.cmpi eq, %c8_i32, %c0_i32 : i32
    %c1_i32 = arith.constant 1 : i32
    %3 = arith.select %2, %c1_i32, %c8_i32 : i32
    %4 = vector.broadcast %3 : i32 to vector<16x128xi32>
    %5 = arith.remsi %1, %4 : vector<16x128xi32>
    %c0_i32_1 = arith.constant 0 : i32
    %6 = vector.broadcast %c0_i32_1 : i32 to vector<16x128xi32>
    %7 = arith.cmpi ne, %5, %6 : vector<16x128xi32>
    %c0_i32_2 = arith.constant 0 : i32
    %8 = vector.broadcast %c0_i32_2 : i32 to vector<16x128xi32>
    %9 = arith.cmpi slt, %5, %8 : vector<16x128xi32>
    %c0_i32_3 = arith.constant 0 : i32
    %10 = arith.cmpi slt, %3, %c0_i32_3 : i32
    %11 = vector.broadcast %10 : i1 to vector<16x128xi1>
    %12 = vector.broadcast %11 : vector<16x128xi1> to vector<16x128xi1>
    %13 = arith.xori %9, %12 : vector<16x128xi1>
    %14 = arith.andi %13, %7 : vector<16x128xi1>
    %15 = vector.broadcast %3 : i32 to vector<16x128xi32>
    %16 = arith.addi %5, %15 : vector<16x128xi32>
    %17 = arith.select %14, %16, %5 : vector<16x128xi1>, vector<16x128xi32>
    %c0_i32_4 = arith.constant 0 : i32
    %18 = vector.broadcast %c0_i32_4 : i32 to vector<16x128xi32>
    %19 = arith.cmpi eq, %17, %18 : vector<16x128xi32>
    %c8_i32_5 = arith.constant 8 : i32
    %c0_i32_6 = arith.constant 0 : i32
    %20 = arith.cmpi eq, %c8_i32_5, %c0_i32_6 : i32
    %c1_i32_7 = arith.constant 1 : i32
    %21 = arith.select %20, %c1_i32_7, %c8_i32_5 : i32
    %22 = vector.broadcast %21 : i32 to vector<16x128xi32>
    %23 = arith.remsi %1, %22 : vector<16x128xi32>
    %c0_i32_8 = arith.constant 0 : i32
    %24 = vector.broadcast %c0_i32_8 : i32 to vector<16x128xi32>
    %25 = arith.cmpi ne, %23, %24 : vector<16x128xi32>
    %c0_i32_9 = arith.constant 0 : i32
    %26 = vector.broadcast %c0_i32_9 : i32 to vector<16x128xi32>
    %27 = arith.cmpi slt, %23, %26 : vector<16x128xi32>
    %c0_i32_10 = arith.constant 0 : i32
    %28 = arith.cmpi slt, %21, %c0_i32_10 : i32
    %29 = vector.broadcast %28 : i1 to vector<16x128xi1>
    %30 = vector.broadcast %29 : vector<16x128xi1> to vector<16x128xi1>
    %31 = arith.xori %27, %30 : vector<16x128xi1>
    %32 = arith.andi %31, %25 : vector<16x128xi1>
    %33 = vector.broadcast %21 : i32 to vector<16x128xi32>
    %34 = arith.addi %23, %33 : vector<16x128xi32>
    %35 = arith.select %32, %34, %23 : vector<16x128xi1>, vector<16x128xi32>
    %c7_i32 = arith.constant 7 : i32
    %36 = vector.broadcast %c7_i32 : i32 to vector<16x128xi32>
    %37 = arith.cmpi eq, %35, %36 : vector<16x128xi32>
    %c1_i32_11 = arith.constant 1 : i32
    %38 = tpu.dynamic_rotate %0 by %c1_i32_11 dim 0 : vector<16x128xf32>, i32 -> vector<16x128xf32>
    %cst = arith.constant 0.000000e+00 : f32
    %39 = vector.broadcast %cst : f32 to vector<16x128xf32>
    %40 = arith.select %19, %39, %38 : vector<16x128xi1>, vector<16x128xf32>
    %c15_i32 = arith.constant 15 : i32
    %41 = tpu.dynamic_rotate %0 by %c15_i32 dim 0 : vector<16x128xf32>, i32 -> vector<16x128xf32>
    %cst_12 = arith.constant 0.000000e+00 : f32
    %42 = vector.broadcast %cst_12 : f32 to vector<16x128xf32>
    %43 = arith.select %37, %42, %41 : vector<16x128xi1>, vector<16x128xf32>
    %44 = tpu.concatenate %40, %0, %43 in 1 : vector<16x128xf32>, vector<16x128xf32>, vector<16x128xf32> -> vector<16x384xf32>
    %c0_13 = arith.constant 0 : index
    %c0_14 = arith.constant 0 : index
    %c0_15 = arith.constant 0 : index
    %45 = vector.load %arg1[%c0_13, %c0_14, %c0_15] : memref<2x384x128xf32, #tpu.memory_space<vmem>>, vector<1x384x128xf32>
    %46 = vector.shape_cast %45 : vector<1x384x128xf32> to vector<384x128xf32>
    %cst_16 = arith.constant dense<0.000000e+00> : vector<16x128xf32>
    %47 = tpu.matmul %44, %46, %cst_16 {dimension_numbers = #tpu.dot_dimension_numbers<[1], [0], [0], [1], [0, 0, 1, 1], [], []>} : vector<16x384xf32>, vector<384x128xf32>, vector<16x128xf32> -> vector<16x128xf32>
    %c0_17 = arith.constant 0 : index
    %c0_18 = arith.constant 0 : index
    %c0_19 = arith.constant 0 : index
    %48 = vector.load %arg2[%c0_17, %c0_18, %c0_19] : memref<2x1x128xf32, #tpu.memory_space<vmem>>, vector<1x1x128xf32>
    %49 = vector.shape_cast %48 : vector<1x1x128xf32> to vector<1x128xf32>
    %50 = vector.broadcast %49 : vector<1x128xf32> to vector<16x128xf32>
    %51 = arith.addf %47, %50 : vector<16x128xf32>
    %cst_20 = arith.constant dense<0.000000e+00> : vector<128xf32>
    %52 = vector.multi_reduction <add>, %51, %cst_20 [0] : vector<16x128xf32> to vector<128xf32>
    %53 = vector.shape_cast %52 : vector<128xf32> to vector<1x128xf32>
    %54 = arith.mulf %51, %51 : vector<16x128xf32>
    %cst_21 = arith.constant dense<0.000000e+00> : vector<128xf32>
    %55 = vector.multi_reduction <add>, %54, %cst_21 [0] : vector<16x128xf32> to vector<128xf32>
    %56 = vector.shape_cast %55 : vector<128xf32> to vector<1x128xf32>
    %c64_i32 = arith.constant 64 : i32
    %57 = tpu.dynamic_rotate %53 by %c64_i32 dim 1 : vector<1x128xf32>, i32 -> vector<1x128xf32>
    %58 = arith.addf %53, %57 : vector<1x128xf32>
    %c64_i32_22 = arith.constant 64 : i32
    %59 = tpu.dynamic_rotate %56 by %c64_i32_22 dim 1 : vector<1x128xf32>, i32 -> vector<1x128xf32>
    %60 = arith.addf %56, %59 : vector<1x128xf32>
    %c32_i32 = arith.constant 32 : i32
    %61 = tpu.dynamic_rotate %58 by %c32_i32 dim 1 : vector<1x128xf32>, i32 -> vector<1x128xf32>
    %62 = arith.addf %58, %61 : vector<1x128xf32>
    %c32_i32_23 = arith.constant 32 : i32
    %63 = tpu.dynamic_rotate %60 by %c32_i32_23 dim 1 : vector<1x128xf32>, i32 -> vector<1x128xf32>
    %64 = arith.addf %60, %63 : vector<1x128xf32>
    %c16_i32 = arith.constant 16 : i32
    %65 = tpu.dynamic_rotate %62 by %c16_i32 dim 1 : vector<1x128xf32>, i32 -> vector<1x128xf32>
    %66 = arith.addf %62, %65 : vector<1x128xf32>
    %c16_i32_24 = arith.constant 16 : i32
    %67 = tpu.dynamic_rotate %64 by %c16_i32_24 dim 1 : vector<1x128xf32>, i32 -> vector<1x128xf32>
    %68 = arith.addf %64, %67 : vector<1x128xf32>
    %c8_i32_25 = arith.constant 8 : i32
    %69 = tpu.dynamic_rotate %66 by %c8_i32_25 dim 1 : vector<1x128xf32>, i32 -> vector<1x128xf32>
    %70 = arith.addf %66, %69 : vector<1x128xf32>
    %c8_i32_26 = arith.constant 8 : i32
    %71 = tpu.dynamic_rotate %68 by %c8_i32_26 dim 1 : vector<1x128xf32>, i32 -> vector<1x128xf32>
    %72 = arith.addf %68, %71 : vector<1x128xf32>
    %c4_i32 = arith.constant 4 : i32
    %73 = tpu.dynamic_rotate %70 by %c4_i32 dim 1 : vector<1x128xf32>, i32 -> vector<1x128xf32>
    %74 = arith.addf %70, %73 : vector<1x128xf32>
    %c4_i32_27 = arith.constant 4 : i32
    %75 = tpu.dynamic_rotate %72 by %c4_i32_27 dim 1 : vector<1x128xf32>, i32 -> vector<1x128xf32>
    %76 = arith.addf %72, %75 : vector<1x128xf32>
    %cst_28 = arith.constant 0.001953125 : f32
    %77 = vector.broadcast %cst_28 : f32 to vector<1x128xf32>
    %78 = arith.mulf %74, %77 : vector<1x128xf32>
    %cst_29 = arith.constant 0.001953125 : f32
    %79 = vector.broadcast %cst_29 : f32 to vector<1x128xf32>
    %80 = arith.mulf %76, %79 : vector<1x128xf32>
    %81 = arith.mulf %78, %78 : vector<1x128xf32>
    %82 = arith.subf %80, %81 : vector<1x128xf32>
    %c0_30 = arith.constant 0 : index
    %c0_31 = arith.constant 0 : index
    %c0_32 = arith.constant 0 : index
    %83 = vector.load %arg3[%c0_30, %c0_31, %c0_32] : memref<2x1x128xf32, #tpu.memory_space<vmem>>, vector<1x1x128xf32>
    %84 = vector.shape_cast %83 : vector<1x1x128xf32> to vector<1x128xf32>
    %cst_33 = arith.constant 9.99999974E-6 : f32
    %85 = vector.broadcast %cst_33 : f32 to vector<1x128xf32>
    %86 = arith.addf %82, %85 : vector<1x128xf32>
    %87 = math.rsqrt %86 : vector<1x128xf32>
    %88 = arith.mulf %84, %87 : vector<1x128xf32>
    %c0_34 = arith.constant 0 : index
    %c0_35 = arith.constant 0 : index
    %c0_36 = arith.constant 0 : index
    %89 = vector.load %arg4[%c0_34, %c0_35, %c0_36] : memref<2x1x128xf32, #tpu.memory_space<vmem>>, vector<1x1x128xf32>
    %90 = vector.shape_cast %89 : vector<1x1x128xf32> to vector<1x128xf32>
    %91 = arith.mulf %78, %88 : vector<1x128xf32>
    %92 = arith.subf %90, %91 : vector<1x128xf32>
    %93 = vector.broadcast %88 : vector<1x128xf32> to vector<16x128xf32>
    %94 = arith.mulf %51, %93 : vector<16x128xf32>
    %95 = vector.broadcast %92 : vector<1x128xf32> to vector<16x128xf32>
    %96 = arith.addf %94, %95 : vector<16x128xf32>
    %cst_37 = arith.constant 0.000000e+00 : f32
    %97 = vector.broadcast %cst_37 : f32 to vector<16x128xf32>
    %98 = arith.maximumf %96, %97 : vector<16x128xf32>
    %c1_i32_38 = arith.constant 1 : i32
    %99 = tpu.dynamic_rotate %98 by %c1_i32_38 dim 0 : vector<16x128xf32>, i32 -> vector<16x128xf32>
    %cst_39 = arith.constant 0.000000e+00 : f32
    %100 = vector.broadcast %cst_39 : f32 to vector<16x128xf32>
    %101 = arith.select %19, %100, %99 : vector<16x128xi1>, vector<16x128xf32>
    %c15_i32_40 = arith.constant 15 : i32
    %102 = tpu.dynamic_rotate %98 by %c15_i32_40 dim 0 : vector<16x128xf32>, i32 -> vector<16x128xf32>
    %cst_41 = arith.constant 0.000000e+00 : f32
    %103 = vector.broadcast %cst_41 : f32 to vector<16x128xf32>
    %104 = arith.select %37, %103, %102 : vector<16x128xi1>, vector<16x128xf32>
    %105 = tpu.concatenate %101, %98, %104 in 1 : vector<16x128xf32>, vector<16x128xf32>, vector<16x128xf32> -> vector<16x384xf32>
    %c1 = arith.constant 1 : index
    %c0_42 = arith.constant 0 : index
    %c0_43 = arith.constant 0 : index
    %106 = vector.load %arg1[%c1, %c0_42, %c0_43] : memref<2x384x128xf32, #tpu.memory_space<vmem>>, vector<1x384x128xf32>
    %107 = vector.shape_cast %106 : vector<1x384x128xf32> to vector<384x128xf32>
    %cst_44 = arith.constant dense<0.000000e+00> : vector<16x128xf32>
    %108 = tpu.matmul %105, %107, %cst_44 {dimension_numbers = #tpu.dot_dimension_numbers<[1], [0], [0], [1], [0, 0, 1, 1], [], []>} : vector<16x384xf32>, vector<384x128xf32>, vector<16x128xf32> -> vector<16x128xf32>
    %c1_45 = arith.constant 1 : index
    %c0_46 = arith.constant 0 : index
    %c0_47 = arith.constant 0 : index
    %109 = vector.load %arg2[%c1_45, %c0_46, %c0_47] : memref<2x1x128xf32, #tpu.memory_space<vmem>>, vector<1x1x128xf32>
    %110 = vector.shape_cast %109 : vector<1x1x128xf32> to vector<1x128xf32>
    %111 = vector.broadcast %110 : vector<1x128xf32> to vector<16x128xf32>
    %112 = arith.addf %108, %111 : vector<16x128xf32>
    %cst_48 = arith.constant dense<0.000000e+00> : vector<128xf32>
    %113 = vector.multi_reduction <add>, %112, %cst_48 [0] : vector<16x128xf32> to vector<128xf32>
    %114 = vector.shape_cast %113 : vector<128xf32> to vector<1x128xf32>
    %115 = arith.mulf %112, %112 : vector<16x128xf32>
    %cst_49 = arith.constant dense<0.000000e+00> : vector<128xf32>
    %116 = vector.multi_reduction <add>, %115, %cst_49 [0] : vector<16x128xf32> to vector<128xf32>
    %117 = vector.shape_cast %116 : vector<128xf32> to vector<1x128xf32>
    %c64_i32_50 = arith.constant 64 : i32
    %118 = tpu.dynamic_rotate %114 by %c64_i32_50 dim 1 : vector<1x128xf32>, i32 -> vector<1x128xf32>
    %119 = arith.addf %114, %118 : vector<1x128xf32>
    %c64_i32_51 = arith.constant 64 : i32
    %120 = tpu.dynamic_rotate %117 by %c64_i32_51 dim 1 : vector<1x128xf32>, i32 -> vector<1x128xf32>
    %121 = arith.addf %117, %120 : vector<1x128xf32>
    %c32_i32_52 = arith.constant 32 : i32
    %122 = tpu.dynamic_rotate %119 by %c32_i32_52 dim 1 : vector<1x128xf32>, i32 -> vector<1x128xf32>
    %123 = arith.addf %119, %122 : vector<1x128xf32>
    %c32_i32_53 = arith.constant 32 : i32
    %124 = tpu.dynamic_rotate %121 by %c32_i32_53 dim 1 : vector<1x128xf32>, i32 -> vector<1x128xf32>
    %125 = arith.addf %121, %124 : vector<1x128xf32>
    %c16_i32_54 = arith.constant 16 : i32
    %126 = tpu.dynamic_rotate %123 by %c16_i32_54 dim 1 : vector<1x128xf32>, i32 -> vector<1x128xf32>
    %127 = arith.addf %123, %126 : vector<1x128xf32>
    %c16_i32_55 = arith.constant 16 : i32
    %128 = tpu.dynamic_rotate %125 by %c16_i32_55 dim 1 : vector<1x128xf32>, i32 -> vector<1x128xf32>
    %129 = arith.addf %125, %128 : vector<1x128xf32>
    %c8_i32_56 = arith.constant 8 : i32
    %130 = tpu.dynamic_rotate %127 by %c8_i32_56 dim 1 : vector<1x128xf32>, i32 -> vector<1x128xf32>
    %131 = arith.addf %127, %130 : vector<1x128xf32>
    %c8_i32_57 = arith.constant 8 : i32
    %132 = tpu.dynamic_rotate %129 by %c8_i32_57 dim 1 : vector<1x128xf32>, i32 -> vector<1x128xf32>
    %133 = arith.addf %129, %132 : vector<1x128xf32>
    %c4_i32_58 = arith.constant 4 : i32
    %134 = tpu.dynamic_rotate %131 by %c4_i32_58 dim 1 : vector<1x128xf32>, i32 -> vector<1x128xf32>
    %135 = arith.addf %131, %134 : vector<1x128xf32>
    %c4_i32_59 = arith.constant 4 : i32
    %136 = tpu.dynamic_rotate %133 by %c4_i32_59 dim 1 : vector<1x128xf32>, i32 -> vector<1x128xf32>
    %137 = arith.addf %133, %136 : vector<1x128xf32>
    %cst_60 = arith.constant 0.001953125 : f32
    %138 = vector.broadcast %cst_60 : f32 to vector<1x128xf32>
    %139 = arith.mulf %135, %138 : vector<1x128xf32>
    %cst_61 = arith.constant 0.001953125 : f32
    %140 = vector.broadcast %cst_61 : f32 to vector<1x128xf32>
    %141 = arith.mulf %137, %140 : vector<1x128xf32>
    %142 = arith.mulf %139, %139 : vector<1x128xf32>
    %143 = arith.subf %141, %142 : vector<1x128xf32>
    %c1_62 = arith.constant 1 : index
    %c0_63 = arith.constant 0 : index
    %c0_64 = arith.constant 0 : index
    %144 = vector.load %arg3[%c1_62, %c0_63, %c0_64] : memref<2x1x128xf32, #tpu.memory_space<vmem>>, vector<1x1x128xf32>
    %145 = vector.shape_cast %144 : vector<1x1x128xf32> to vector<1x128xf32>
    %cst_65 = arith.constant 9.99999974E-6 : f32
    %146 = vector.broadcast %cst_65 : f32 to vector<1x128xf32>
    %147 = arith.addf %143, %146 : vector<1x128xf32>
    %148 = math.rsqrt %147 : vector<1x128xf32>
    %149 = arith.mulf %145, %148 : vector<1x128xf32>
    %c1_66 = arith.constant 1 : index
    %c0_67 = arith.constant 0 : index
    %c0_68 = arith.constant 0 : index
    %150 = vector.load %arg4[%c1_66, %c0_67, %c0_68] : memref<2x1x128xf32, #tpu.memory_space<vmem>>, vector<1x1x128xf32>
    %151 = vector.shape_cast %150 : vector<1x1x128xf32> to vector<1x128xf32>
    %152 = arith.mulf %139, %149 : vector<1x128xf32>
    %153 = arith.subf %151, %152 : vector<1x128xf32>
    %154 = vector.broadcast %149 : vector<1x128xf32> to vector<16x128xf32>
    %155 = arith.mulf %112, %154 : vector<16x128xf32>
    %156 = vector.broadcast %153 : vector<1x128xf32> to vector<16x128xf32>
    %157 = arith.addf %155, %156 : vector<16x128xf32>
    %cst_69 = arith.constant 0.000000e+00 : f32
    %158 = vector.broadcast %cst_69 : f32 to vector<16x128xf32>
    %159 = arith.maximumf %157, %158 : vector<16x128xf32>
    %160 = arith.addf %159, %0 : vector<16x128xf32>
    %c0_70 = arith.constant 0 : index
    %c0_71 = arith.constant 0 : index
    %161 = vector.load %arg5[%c0_70, %c0_71] : memref<128x32xf32, #tpu.memory_space<vmem>>, vector<128x32xf32>
    %cst_72 = arith.constant dense<0.000000e+00> : vector<16x32xf32>
    %162 = tpu.matmul %160, %161, %cst_72 {dimension_numbers = #tpu.dot_dimension_numbers<[1], [0], [0], [1], [0, 0, 1, 1], [], []>} : vector<16x128xf32>, vector<128x32xf32>, vector<16x32xf32> -> vector<16x32xf32>
    %c0_73 = arith.constant 0 : index
    %c0_74 = arith.constant 0 : index
    %163 = vector.load %arg6[%c0_73, %c0_74] : memref<1x32xf32, #tpu.memory_space<vmem>>, vector<1x32xf32>
    %164 = vector.broadcast %163 : vector<1x32xf32> to vector<16x32xf32>
    %165 = arith.addf %162, %164 : vector<16x32xf32>
    %cst_75 = arith.constant 0.000000e+00 : f32
    %166 = vector.broadcast %cst_75 : f32 to vector<16x32xf32>
    %167 = arith.maximumf %165, %166 : vector<16x32xf32>
    %c0_76 = arith.constant 0 : index
    %c0_77 = arith.constant 0 : index
    %168 = vector.load %arg7[%c0_76, %c0_77] : memref<16x32xf32, #tpu.memory_space<vmem>>, vector<16x32xf32>
    tpu.vector_store %arg7[%c0_76, %c0_77], %167 {strides = array<i32>} : memref<16x32xf32, #tpu.memory_space<vmem>>, vector<16x32xf32>,
    return
  }
}

</mosaic_0001>

<bundles_post_ra>
// kernel: ds_forward.1
= control target key start
LH: loop header
LB: loop body
LE: loop exit
PB: predicated region body
PF: predicated region fallthrough
CT: control target
= control target key end

     0   :  { %v28_v28 = vlaneseq  ;;  %s1236_s9 = smov 64   ;;  %s1237_s10 = smov 32   ;;  %vm751_vm6 = vcmask 261120   ;;  %s1775_s1 = inlined_call_operand.vmem [shape: f32[2,384,128], index: 1, kind: input, shape index: {}]   ;;  %s1776_s0 = inlined_call_operand.vmem [shape: f32[16,128], index: 0, kind: input, shape index: {}]   ;;  %s1777_s2 = inlined_call_operand.vmem [shape: f32[2,1,128], index: 2, kind: input, shape index: {}]   ;;  %s1778_s3 = inlined_call_operand.vmem [shape: f32[2,1,128], index: 3, kind: input, shape index: {}]   ;;  %s1779_s4 = inlined_call_operand.vmem [shape: f32[2,1,128], index: 4, kind: input, shape index: {}]   ;;  %s1780_s5 = inlined_call_operand.vmem [shape: f32[128,32], index: 5, kind: input, shape index: {}]   ;;  %s1781_s6 = inlined_call_operand.vmem [shape: f32[1,32], index: 6, kind: input, shape index: {}]   ;;  %s1782_s7 = inlined_call_operand.vmem [shape: f32[16,32], index: 7, kind: output, shape index: {}]  }
   0x1   :  { %v89_v0 = vld [vmem:[%s1775_s1 + $0x80] sm:$0xff]  ;;  %v90_v1 = vld [vmem:[%s1775_s1 + $0x88] sm:$0xff]  ;;  %v91_v5 = vld [vmem:[%s1775_s1 + $0x90] sm:$0xff]  ;;  %s1238_s11 = smov 16   ;;  %s1239_s12 = smov 8  }
   0x2   :  { %v73_v2 = vld [vmem:[%s1775_s1] sm:$0xff]  ;;  %v1067_v3 = vpack.c.bf16 %v90_v1, %v89_v0  ;;  %v74_v4 = vld [vmem:[%s1775_s1 + $0x8] sm:$0xff]  ;;  %v92_v6 = vld [vmem:[%s1775_s1 + $0x98] sm:$0xff]  ;;  %v1359_v38 = vshrl.u32 %v28_v28, 7  ;;  %s1240_s27 = smov 4  }
   0x3   :  { %v1069_v7 = vpack.c.bf16 %v74_v4, %v73_v2  ;;  %v1071_v8 = vpack.c.bf16 %v92_v6, %v91_v5  ;;  %v105_v9 = vld [vmem:[%s1775_s1 + $0x100] sm:$0xff]  ;;  %v106_v10 = vld [vmem:[%s1775_s1 + $0x108] sm:$0xff]  ;;  %v75_v11 = vld [vmem:[%s1775_s1 + $0x10] sm:$0xff] }
   0x4   :  { %1068 = vmatprep.subr.bf16.mxu0 %v1067_v3  ;;  %v1099_v12 = vpack.c.bf16 %v106_v10, %v105_v9  ;;  %v76_v13 = vld [vmem:[%s1775_s1 + $0x18] sm:$0xff]  ;;  %v93_v14 = vld [vmem:[%s1775_s1 + $0xa0] sm:$0xff]  ;;  %v94_v15 = vld [vmem:[%s1775_s1 + $0xa8] sm:$0xff]  ;;  %v35_v49 = vand.u32 7, %v1359_v38  ;;  %vm68_vm0 = vcmp.lt.s32.totalorder %v1359_v38, 7  ;;  %vm61_vm2 = vcmp.lt.s32.totalorder %v1359_v38, 1 }
   0x5   :  { %1070 = vmatpush3.bf16.msra.mxu0 %v1069_v7  ;;  %v1073_v16 = vpack.c.bf16 %v76_v13, %v75_v11  ;;  %v107_v17 = vld [vmem:[%s1775_s1 + $0x110] sm:$0xff]  ;;  %v108_v18 = vld [vmem:[%s1775_s1 + $0x118] sm:$0xff]  ;;  %v1075_v19 = vpack.c.bf16 %v94_v15, %v93_v14  ;;  %v77_v21 = vld [vmem:[%s1775_s1 + $0x20] sm:$0xff]  ;;  %v30_v15 = vadd.s32 8, %v1359_v38 }
   0x6   :  { %1072 = vmatprep.subr.bf16.mxu0 %v1071_v8  ;;  %1100 = vmatprep.subr.bf16.mxu1 %v1099_v12  ;;  %v1103_v20 = vpack.c.bf16 %v108_v18, %v107_v17  ;;  %v78_v22 = vld [vmem:[%s1775_s1 + $0x28] sm:$0xff]  ;;  %v95_v23 = vld [vmem:[%s1775_s1 + $0xb0] sm:$0xff]  ;;  %v96_v24 = vld [vmem:[%s1775_s1 + $0xb8] sm:$0xff]  ;;  %vm1406_vm1 = vcmp.ne.s32.totalorder %v35_v49, 7  ;;  %vm1456_vm3 = vcmp.ne.s32.totalorder %v35_v49, 0 }
   0x7   :  { %1102 = vmatpush3.bf16.msra.mxu1 %v1099_v12  ;;  %v109_v25 = vld [vmem:[%s1775_s1 + $0x120] sm:$0xff]  ;;  %v110_v26 = vld [vmem:[%s1775_s1 + $0x128] sm:$0xff]  ;;  %v1077_v29 = vpack.c.bf16 %v78_v22, %v77_v21  ;;  %v111_v30 = vld [vmem:[%s1775_s1 + $0x130] sm:$0xff]  ;;  %v1079_v32 = vpack.c.bf16 %v96_v24, %v95_v23 }
   0x8   :  { %1104 = vmatprep.subr.bf16.mxu1 %v1103_v20  ;;  %v1107_v27 = vpack.c.bf16 %v110_v26, %v109_v25  ;;  %v112_v31 = vld [vmem:[%s1775_s1 + $0x138] sm:$0xff]  ;;  %v79_v33 = vld [vmem:[%s1775_s1 + $0x30] sm:$0xff]  ;;  %v97_v35 = vld [vmem:[%s1775_s1 + $0xc0] sm:$0xff] }
   0x9   :  { %1074 = vmatpush3.bf16.msra.mxu0 %v1073_v16  ;;  %v80_v34 = vld [vmem:[%s1775_s1 + $0x38] sm:$0xff]  ;;  %v98_v36 = vld [vmem:[%s1775_s1 + $0xc8] sm:$0xff]  ;;  %v1111_v37 = vpack.c.bf16 %v112_v31, %v111_v30  ;;  %v113_v40 = vld [vmem:[%s1775_s1 + $0x140] sm:$0xff] }
   0xa   :  { %1076 = vmatprep.subr.bf16.mxu0 %v1075_v19  ;;  %v1081_v39 = vpack.c.bf16 %v80_v34, %v79_v33  ;;  %v114_v41 = vld [vmem:[%s1775_s1 + $0x148] sm:$0xff]  ;;  %v1083_v42 = vpack.c.bf16 %v98_v36, %v97_v35  ;;  %v81_v43 = vld [vmem:[%s1775_s1 + $0x40] sm:$0xff]  ;;  %v99_v45 = vld [vmem:[%s1775_s1 + $0xd0] sm:$0xff] }
   0xb   :  { %1106 = vmatpush3.bf16.msra.mxu1 %v1103_v20  ;;  %v82_v44 = vld [vmem:[%s1775_s1 + $0x48] sm:$0xff]  ;;  %v100_v46 = vld [vmem:[%s1775_s1 + $0xd8] sm:$0xff]  ;;  %v1115_v47 = vpack.c.bf16 %v114_v41, %v113_v40  ;;  %v1382_v48 = vld [vmem:[%s1776_s0] sm:$0xff]  ;;  %v42_v20 = vand.u32 7, %v30_v15 }
   0xc   :  { %1108 = vmatprep.subr.bf16.mxu1 %v1107_v27  ;;  %v1085_v50 = vpack.c.bf16 %v82_v44, %v81_v43  ;;  %v115_v51 = vld [vmem:[%s1775_s1 + $0x150] sm:$0xff]  ;;  %v116_v52 = vld [vmem:[%s1775_s1 + $0x158] sm:$0xff]  ;;  %v1394_v53 = vld [vmem:[%s1776_s0 + $0x8] sm:$0xff]  ;;  %192 = vmatprep.mubr.f32.mxu0 %v1382_v48  ;;  %v66_v54 = vrot.slane %v1382_v48, 1  ;;  %v1087_v55 = vpack.c.bf16 %v100_v46, %v99_v45  ;;  %v59_v18 = vrot.slane %v1382_v48, 7 }
   0xd   :  { %1078 = vmatpush3.bf16.msra.mxu0 %v1077_v29  ;;  %v83_v56 = vld [vmem:[%s1775_s1 + $0x50] sm:$0xff]  ;;  %v84_v57 = vld [vmem:[%s1775_s1 + $0x58] sm:$0xff]  ;;  %v67_v58 = vrot.slane %v1394_v53, 1  ;;  %v101_v60 = vld [vmem:[%s1775_s1 + $0xe0] sm:$0xff]  ;;  %v1119_v62 = vpack.c.bf16 %v116_v52, %v115_v51  ;;  %v60_v19 = vrot.slane %v1394_v53, 7  ;;  %vm1462_vm4 = vcmp.ne.s32.totalorder %v42_v20, 7 }
   0xe   :  { %1080 = vmatprep.subr.bf16.mxu0 %v1079_v32  ;;  %v102_v61 = vld [vmem:[%s1775_s1 + $0xe8] sm:$0xff]  ;;  %v1089_v0 = vpack.c.bf16 %v84_v57, %v83_v56  ;;  %v117_v1 = vld [vmem:[%s1775_s1 + $0x160] sm:$0xff]  ;;  %v103_v6 = vld [vmem:[%s1775_s1 + $0xf0] sm:$0xff]  ;;  %vm1471_vm5 = vcmp.ne.s32.totalorder %v42_v20, 0 }
   0xf   :  { %1110 = vmatpush3.bf16.msra.mxu1 %v1107_v27  ;;  %v69_v63 = vsel %vm68_vm0, %v66_v54, %v67_v58  ;;  %v118_v2 = vld [vmem:[%s1775_s1 + $0x168] sm:$0xff]  ;;  %v1091_v3 = vpack.c.bf16 %v102_v61, %v101_v60  ;;  %v85_v4 = vld [vmem:[%s1775_s1 + $0x60] sm:$0xff]  ;;  %v104_v7 = vld [vmem:[%s1775_s1 + $0xf8] sm:$0xff]  ;;  %v63_v21 = vsel %vm61_vm2, %v60_v19, %v59_v18  ;;  %v70_v23 = vsel %vm68_vm0, %v67_v58, %v66_v54 }
  0x10   :  { %1112 = vmatprep.subr.bf16.mxu1 %v1111_v37  ;;  %994 = vmatprep.mubr.msk.f32.mxu1 %vm1406_vm1, %v69_v63  ;;  %v86_v5 = vld [vmem:[%s1775_s1 + $0x68] sm:$0xff]  ;;  %v1123_v8 = vpack.c.bf16 %v118_v2, %v117_v1  ;;  %v119_v10 = vld [vmem:[%s1775_s1 + $0x170] sm:$0xff]  ;;  %v120_v11 = vld [vmem:[%s1775_s1 + $0x178] sm:$0xff]  ;;  %v1095_v12 = vpack.c.bf16 %v104_v7, %v103_v6  ;;  %v62_v25 = vsel %vm61_vm2, %v59_v18, %v60_v19 }
  0x11   :  { %1082 = vmatpush3.bf16.msra.mxu0 %v1081_v39  ;;  %v1093_v9 = vpack.c.bf16 %v86_v5, %v85_v4  ;;  %v87_v13 = vld [vmem:[%s1775_s1 + $0x70] sm:$0xff]  ;;  %v88_v14 = vld [vmem:[%s1775_s1 + $0x78] sm:$0xff]  ;;  %v1127_v16 = vpack.c.bf16 %v120_v11, %v119_v10  ;;  %v758_v29 = vld [vmem:[%s1777_s2] ss:$0 sm:$0xff] }
  0x12   :  { %1084 = vmatprep.subr.bf16.mxu0 %v1083_v42  ;;  %v1097_v17 = vpack.c.bf16 %v88_v14, %v87_v13  ;;  %v767_v11 = vld [vmem:[%s1775_s1 + $0x180] sm:$0xff]  ;;  %v800_v15 = vld [vmem:[%s1775_s1 + $0x288] sm:$0xff]  ;;  %v786_v18 = vld [vmem:[%s1775_s1 + $0x218] sm:$0xff] }
  0x13   :  { %1114 = vmatpush3.bf16.msra.mxu1 %v1111_v37  ;;  %v799_v13 = vld [vmem:[%s1775_s1 + $0x280] sm:$0xff]  ;;  %v769_v20 = vld [vmem:[%s1775_s1 + $0x190] sm:$0xff] }
  0x14   :  { %1116 = vmatprep.subr.bf16.mxu1 %v1115_v47  ;;  %v816_v22 = vld [vmem:[%s1777_s2 + $0x1] ss:$0 sm:$0xff] }
  0x15   :  { %1086 = vmatpush3.bf16.msra.mxu0 %v1085_v50 }
  0x16   :  { %1088 = vmatprep.subr.bf16.mxu0 %v1087_v55 }
  0x17   :  { %1118 = vmatpush3.bf16.msra.mxu1 %v1115_v47 }
  0x18   :  { %1120 = vmatprep.subr.bf16.mxu1 %v1119_v62 }
  0x19   :  { %1090 = vmatpush3.bf16.msra.mxu0 %v1089_v0 }
  0x1a   :  { %1092 = vmatprep.subr.bf16.mxu0 %v1091_v3 }
  0x1b   :  { %1122 = vmatpush3.bf16.msra.mxu1 %v1119_v62 }
  0x1c   :  { %1124 = vmatprep.subr.bf16.mxu1 %v1123_v8 }
  0x1d   :  { %1094 = vmatpush3.bf16.msra.mxu0 %v1093_v9  ;;  %v784_v9 = vld [vmem:[%s1775_s1 + $0x208] sm:$0xff] }
  0x1e   :  { %1096 = vmatprep.subr.bf16.mxu0 %v1095_v12  ;;  %v768_v12 = vld [vmem:[%s1775_s1 + $0x188] sm:$0xff] }
  0x1f   :  { %1126 = vmatpush3.bf16.msra.mxu1 %v1123_v8  ;;  %v783_v8 = vld [vmem:[%s1775_s1 + $0x200] sm:$0xff]  ;;  %v1133_v14 = vpack.c.bf16 %v768_v12, %v767_v11 }
  0x20   :  { %1128 = vmatprep.subr.bf16.mxu1 %v1127_v16  ;;  %v1131_v10 = vpack.c.bf16 %v784_v9, %v783_v8  ;;  %v778_v8 = vld [vmem:[%s1775_s1 + $0x1d8] sm:$0xff]  ;;  %v795_v9 = vld [vmem:[%s1775_s1 + $0x260] sm:$0xff] }
  0x21   :  { %1098 = vmatpush3.bf16.msra.mxu0 %v1097_v17  ;;  %v785_v17 = vld [vmem:[%s1775_s1 + $0x210] sm:$0xff] }
  0x22   :  { %1132 = vmatprep.subr.bf16.mxu0 %v1131_v10  ;;  %v1135_v19 = vpack.c.bf16 %v786_v18, %v785_v17  ;;  %v796_v10 = vld [vmem:[%s1775_s1 + $0x268] sm:$0xff]  ;;  %v797_v18 = vld [vmem:[%s1775_s1 + $0x270] sm:$0xff] }
  0x23   :  { %1130 = vmatpush3.bf16.msra.mxu1 %v1127_v16  ;;  %v1163_v16 = vpack.c.bf16 %v800_v15, %v799_v13  ;;  %v811_v13 = vld [vmem:[%s1775_s1 + $0x2e0] sm:$0xff]  ;;  %v1155_v15 = vpack.c.bf16 %v796_v10, %v795_v9  ;;  %v780_v17 = vld [vmem:[%s1775_s1 + $0x1e8] sm:$0xff] }
  0x24   :  { %760 = vmatmul.mubr.msk.f32.vlgmr.msra.gmra.mrb[0].mxu0 %vm1456_vm3, %v63_v21  ;;  %v770_v21 = vld [vmem:[%s1775_s1 + $0x198] sm:$0xff] }
  0x25   :  { %197 = vmatprep.mubr.f32.mxu0 %v1394_v53  ;;  %1134 = vmatpush3.bf16.msra.mxu0 %v1133_v14  ;;  %v812_v14 = vld [vmem:[%s1775_s1 + $0x2e8] sm:$0xff] }
  0x26   :  { %995 = vmatmul.mubr.msk.f32.vlgmr.msra.gmra.mrb[0].mxu1 %vm1462_vm4, %v70_v23  ;;  %1164 = vmatprep.subr.bf16.mxu1 %v1163_v16  ;;  %v801_v23 = vld [vmem:[%s1775_s1 + $0x290] sm:$0xff] }
  0x27   :  { %1166 = vmatpush3.bf16.msra.mxu1 %v1163_v16  ;;  %1136 = vmatprep.subr.bf16.mxu0 %v1135_v19  ;;  %v779_v16 = vld [vmem:[%s1775_s1 + $0x1e0] sm:$0xff]  ;;  %v798_v19 = vld [vmem:[%s1775_s1 + $0x278] sm:$0xff] }
  0x28   :  { %762 = vmatmul.mubr.msk.f32.gmra.mrb[2].mxu0 %vm1471_vm5, %v62_v25  ;;  %v1137_v25 = vpack.c.bf16 %v770_v21, %v769_v20  ;;  %v1187_v20 = vpack.c.bf16 %v812_v14, %v811_v13  ;;  %v1157_v21 = vpack.c.bf16 %v780_v17, %v779_v16 }
  0x2a   :  { %1138 = vmatpush3.bf16.msra.mxu0 %v1137_v25  ;;  %v781_v25 = vld [vmem:[%s1775_s1 + $0x1f0] sm:$0xff] }
  0xf7   :  { %v864_v27 = vpop.f32.mrb[0].mxu0 }
  0xf8   :  { %v865_v28 = vpop.f32.mrb[1].mxu0 }
  0xf9   :  { %v866_v30 = vadd.f32 %v865_v28, %v864_v27  ;;  %v996_v31 = vpop.f32.mrb[0].mxu1  ;;  %v802_v27 = vld [vmem:[%s1775_s1 + $0x298] sm:$0xff] }
  0xfa   :  { %v269_v32 = vpop.f32.mrb[1].mxu1 }
  0xfb   :  { %v867_v33 = vpop.f32.mrb[2].mxu0  ;;  %v195_v34 = vadd.f32 %v866_v30, %v758_v29 }
  0xfc   :  { %v868_v35 = vpop.f32.mrb[3].mxu0 }
  0xfd   :  { %v869_v36 = vadd.f32 %v868_v35, %v867_v33  ;;  %v1482_v37 = vadd.f32 %v269_v32, %v195_v34  ;;  %v788_v32 = vld [vmem:[%s1775_s1 + $0x228] sm:$0xff]  ;;  %v771_v34 = vld [vmem:[%s1775_s1 + $0x1a0] sm:$0xff] }
  0xfe   :  { %v772_v35 = vld [vmem:[%s1775_s1 + $0x1a8] sm:$0xff] }
  0xff   :  { %v200_v39 = vadd.f32 %v869_v36, %v758_v29  ;;  %v285_v42 = vmul.f32 %v1482_v37, %v1482_v37  ;;  %v1167_v29 = vpack.c.bf16 %v802_v27, %v801_v23  ;;  %v803_v36 = vld [vmem:[%s1775_s1 + $0x2a0] sm:$0xff]  ;;  %v1159_v23 = vpack.c.bf16 %v798_v19, %v797_v18  ;;  %v782_v27 = vld [vmem:[%s1775_s1 + $0x1f8] sm:$0xff] }
 0x101   :  { %v1484_v40 = vadd.f32 %v996_v31, %v200_v39  ;;  %v787_v31 = vld [vmem:[%s1775_s1 + $0x220] sm:$0xff]  ;;  %1168 = vmatprep.subr.bf16.mxu1 %v1167_v29  ;;  %v1141_v39 = vpack.c.bf16 %v772_v35, %v771_v34 }
 0x102   :  { %v1139_v33 = vpack.c.bf16 %v788_v32, %v787_v31  ;;  %1170 = vmatpush3.bf16.msra.mxu1 %v1167_v29  ;;  %v813_v29 = vld [vmem:[%s1775_s1 + $0x2f0] sm:$0xff]  ;;  %v814_v31 = vld [vmem:[%s1775_s1 + $0x2f8] sm:$0xff] }
 0x103   :  { %v278_v41 = vadd.f32 %v1484_v40, %v1482_v37  ;;  %v286_v43 = vmul.f32 %v1484_v40, %v1484_v40  ;;  %v1191_v32 = vpack.c.bf16 %v814_v31, %v813_v29 }
 0x104   :  { %1140 = vmatprep.subr.bf16.mxu0 %v1139_v33 }
 0x105   :  { %v279_v44 = vrot.slane %v278_v41, 4  ;;  %v287_v45 = vadd.f32 %v286_v43, %v285_v42  ;;  %v789_v42 = vld [vmem:[%s1775_s1 + $0x230] sm:$0xff]  ;;  %v790_v43 = vld [vmem:[%s1775_s1 + $0x238] sm:$0xff]  ;;  %1142 = vmatpush3.bf16.msra.mxu0 %v1141_v39 }
 0x107   :  { %v288_v46 = vrot.slane %v287_v45, 4  ;;  %v280_v47 = vadd.f32 %v279_v44, %v278_v41  ;;  %v804_v41 = vld [vmem:[%s1775_s1 + $0x2a8] sm:$0xff] }
 0x109   :  { %v281_v49 = vrot.slane %v280_v47, 2  ;;  %v289_v50 = vadd.f32 %v288_v46, %v287_v45  ;;  %v1171_v45 = vpack.c.bf16 %v804_v41, %v803_v36  ;;  %v1143_v46 = vpack.c.bf16 %v790_v43, %v789_v42 }
 0x10b   :  { %v282_v51 = vadd.f32 %v281_v49, %v280_v47  ;;  %v290_v52 = vrot.slane %v289_v50, 2  ;;  %v773_v47 = vld [vmem:[%s1775_s1 + $0x1b0] sm:$0xff]  ;;  %v774_v49 = vld [vmem:[%s1775_s1 + $0x1b8] sm:$0xff]  ;;  %1172 = vmatprep.subr.bf16.mxu1 %v1171_v45  ;;  %1144 = vmatprep.subr.bf16.mxu0 %v1143_v46  ;;  %v1658_v46 = vsub.s32 0, %v1359_v38 }
 0x10c   :  { %1174 = vmatpush3.bf16.msra.mxu1 %v1171_v45  ;;  %v328_v45 = vld [vmem:[%s1778_s3] sm:$0x1] }
 0x10d   :  { %v283_v54 = vrot.slane %v282_v51, 1  ;;  %v291_v55 = vadd.f32 %v290_v52, %v289_v50  ;;  %v805_v50 = vld [vmem:[%s1775_s1 + $0x2b0] sm:$0xff]  ;;  %v1145_v52 = vpack.c.bf16 %v774_v49, %v773_v47 }
 0x10f   :  { %v284_v56 = vadd.f32 %v283_v54, %v282_v51  ;;  %v292_v57 = vrot.slane %v291_v55, 1  ;;  %v806_v54 = vld [vmem:[%s1775_s1 + $0x2b8] sm:$0xff]  ;;  %1146 = vmatpush3.bf16.msra.mxu0 %v1145_v52 }
 0x111   :  { %294 = vrot.lane.b32.xlu0 %v284_v56, %s1236_s9  ;;  %v293_v58 = vadd.f32 %v292_v57, %v291_v55  ;;  %v791_v55 = vld [vmem:[%s1775_s1 + $0x240] sm:$0xff]  ;;  %v1175_v57 = vpack.c.bf16 %v806_v54, %v805_v50 }
 0x113   :  { %1176 = vmatprep.subr.bf16.mxu1 %v1175_v57 }
 0x114   :  { %1178 = vmatpush3.bf16.msra.mxu1 %v1175_v57 }
 0x115   :  { %297 = vrot.lane.b32.xlu0 %v293_v58, %s1236_s9 }
 0x183   :  { %v295_v60 = vpop.permute.xlu0 %294 }
 0x184   :  { %v296_v61 = vadd.f32 %v295_v60, %v284_v56  ;;  %v792_v56 = vld [vmem:[%s1775_s1 + $0x248] sm:$0xff]  ;;  %v775_v60 = vld [vmem:[%s1775_s1 + $0x1c0] sm:$0xff] }
 0x186   :  { %300 = vrot.lane.b32.xlu1 %v296_v61, %s1237_s10 }
 0x187   :  { %v298_v62 = vpop.permute.xlu0 %297 }
 0x188   :  { %v299_v63 = vadd.f32 %v298_v62, %v293_v58  ;;  %v1147_v58 = vpack.c.bf16 %v792_v56, %v791_v55  ;;  %v807_v62 = vld [vmem:[%s1775_s1 + $0x2c0] sm:$0xff] }
 0x18a   :  { %303 = vrot.lane.b32.xlu1 %v299_v63, %s1237_s10  ;;  %1148 = vmatprep.subr.bf16.mxu0 %v1147_v58 }
 0x1f8   :  { %v301_v0 = vpop.permute.xlu1 %300 }
 0x1f9   :  { %v302_v1 = vadd.f32 %v301_v0, %v296_v61  ;;  %v776_v61 = vld [vmem:[%s1775_s1 + $0x1c8] sm:$0xff]  ;;  %v793_v0 = vld [vmem:[%s1775_s1 + $0x250] sm:$0xff] }
 0x1fb   :  { %306 = vrot.lane.b32.xlu0 %v302_v1, %s1238_s11 }
 0x1fc   :  { %v304_v2 = vpop.permute.xlu1 %303 }
 0x1fd   :  { %v305_v3 = vadd.f32 %v304_v2, %v299_v63  ;;  %v808_v63 = vld [vmem:[%s1775_s1 + $0x2c8] sm:$0xff] }
 0x1fe   :  { %v1179_v2 = vpack.c.bf16 %v808_v63, %v807_v62 }
 0x1ff   :  { %309 = vrot.lane.b32.xlu1 %v305_v3, %s1238_s11 }
 0x200   :  { %1180 = vmatprep.subr.bf16.mxu1 %v1179_v2 }
 0x201   :  { %1182 = vmatpush3.bf16.msra.mxu1 %v1179_v2 }
 0x26d   :  { %v307_v4 = vpop.permute.xlu0 %306 }
 0x26e   :  { %v308_v5 = vadd.f32 %v307_v4, %v302_v1  ;;  %v794_v1 = vld [vmem:[%s1775_s1 + $0x258] sm:$0xff]  ;;  %v809_v4 = vld [vmem:[%s1775_s1 + $0x2d0] sm:$0xff] }
 0x270   :  { %312 = vrot.lane.b32.xlu0 %v308_v5, %s1239_s12 }
 0x271   :  { %v310_v6 = vpop.permute.xlu1 %309 }
 0x272   :  { %v311_v7 = vadd.f32 %v310_v6, %v305_v3  ;;  %v1149_v3 = vpack.c.bf16 %v776_v61, %v775_v60  ;;  %v1151_v6 = vpack.c.bf16 %v794_v1, %v793_v0 }
 0x274   :  { %315 = vrot.lane.b32.xlu1 %v311_v7, %s1239_s12  ;;  %1150 = vmatpush3.bf16.msra.mxu0 %v1149_v3 }
 0x275   :  { %1152 = vmatprep.subr.bf16.mxu0 %v1151_v6 }
 0x2e2   :  { %v313_v28 = vpop.permute.xlu0 %312 }
 0x2e3   :  { %v1536_v30 = vadd.f32 %v313_v28, %v308_v5  ;;  %v810_v5 = vld [vmem:[%s1775_s1 + $0x2d8] sm:$0xff]  ;;  %v1161_v28 = vpack.c.bf16 %v782_v27, %v781_v25 }
 0x2e4   :  { %v1183_v11 = vpack.c.bf16 %v810_v5, %v809_v4 }
 0x2e5   :  { %318 = vrot.lane.b32.xlu0 %v1536_v30, %s1240_s27 }
 0x2e6   :  { %v316_v44 = vpop.permute.xlu1 %315  ;;  %1184 = vmatprep.subr.bf16.mxu1 %v1183_v11 }
 0x2e7   :  { %v1573_v51 = vadd.f32 %v316_v44, %v311_v7  ;;  %v777_v7 = vld [vmem:[%s1775_s1 + $0x1d0] sm:$0xff]  ;;  %1186 = vmatpush3.bf16.msra.mxu1 %v1183_v11 }
 0x2e8   :  { %v1153_v12 = vpack.c.bf16 %v778_v8, %v777_v7  ;;  %1188 = vmatprep.subr.bf16.mxu1 %v1187_v20 }
 0x2e9   :  { %321 = vrot.lane.b32.xlu1 %v1573_v51, %s1240_s27 }
 0x2ea   :  { %1154 = vmatpush3.bf16.msra.mxu0 %v1153_v12 }
 0x2eb   :  { %1156 = vmatprep.subr.bf16.mxu0 %v1155_v15  ;;  %1190 = vmatpush3.bf16.msra.mxu1 %v1187_v20 }
 0x2ec   :  { %1192 = vmatprep.subr.bf16.mxu1 %v1191_v32 }
 0x2ee   :  { %1158 = vmatpush3.bf16.msra.mxu0 %v1157_v21 }
 0x2ef   :  { %1160 = vmatprep.subr.bf16.mxu0 %v1159_v23  ;;  %1194 = vmatpush3.bf16.msra.mxu1 %v1191_v32 }
 0x2f2   :  { %1162 = vmatpush3.bf16.msra.mxu0 %v1161_v28 }
 0x357   :  { %v319_v33 = vpop.permute.xlu0 %318 }
 0x358   :  { %v320_v34 = vadd.f32 %v319_v33, %v1536_v30  ;;  %v332_v30 = vld [vmem:[%s1779_s4] sm:$0x1] }
 0x35a   :  { %v324_v35 = vmul.f32 0.001953125, %v320_v34 }
 0x35b   :  { %v322_v36 = vpop.permute.xlu1 %321 }
 0x35c   :  { %v323_v39 = vadd.f32 %v322_v36, %v1573_v51  ;;  %v326_v41 = vmul.f32 %v324_v35, %v324_v35 }
 0x35e   :  { %v325_v42 = vmul.f32 0.001953125, %v323_v39 }
 0x360   :  { %v327_v43 = vsub.f32 %v325_v42, %v326_v41 }
 0x362   :  { %v329_v44 = vadd.f32 1e-05, %v327_v43 }
 0x364   :  { %1232 = vrsqrt.f32 %v329_v44 }
 0x36e   :  { %v1233_v47 = vpop.eup %1232 }
 0x36f   :  { %v331_v49 = vmul.f32 %v1233_v47, %v328_v45 }
 0x371   :  { %v333_v50 = vmul.f32 %v331_v49, %v324_v35  ;;  %v339_v51 = vrot.slane %v331_v49, %v1658_v46  ;;  %v651_v49 = vld [vmem:[%s1780_s5] sm:$0xff] }
 0x373   :  { %v334_v52 = vsub.f32 %v332_v30, %v333_v50  ;;  %v341_v54 = vmul.f32 %v339_v51, %v1482_v37  ;;  %v342_v55 = vmul.f32 %v339_v51, %v1484_v40  ;;  %v652_v30 = vld [vmem:[%s1780_s5 + $0x8] sm:$0xff]  ;;  %v653_v51 = vld [vmem:[%s1780_s5 + $0x10] sm:$0xff] }
 0x374   :  { %v1195_v50 = vpack.c.bf16 %v652_v30, %v651_v49 }
 0x375   :  { %v347_v56 = vrot.slane %v334_v52, %v1658_v46  ;;  %v654_v52 = vld [vmem:[%s1780_s5 + $0x18] sm:$0xff] }
 0x376   :  { %1196 = vmatprep.subr.bf16.mxu0 %v1195_v50 }
 0x377   :  { %v349_v57 = vadd.f32 %v347_v56, %v341_v54  ;;  %v350_v58 = vadd.f32 %v347_v56, %v342_v55  ;;  %v1199_v54 = vpack.c.bf16 %v654_v52, %v653_v51  ;;  %v655_v55 = vld [vmem:[%s1780_s5 + $0x20] sm:$0xff]  ;;  %v656_v56 = vld [vmem:[%s1780_s5 + $0x28] sm:$0xff] }
 0x379   :  { %v351_v60 = vmax.f32 %v349_v57, 0.0  ;;  %v352_v61 = vmax.f32 %v350_v58, 0.0  ;;  %v1203_v58 = vpack.c.bf16 %v656_v56, %v655_v55 }
 0x37b   :  { %v353_v62 = vrot.slane %v351_v60, 7  ;;  %486 = vmatprep.mubr.f32.mxu0 %v351_v60  ;;  %v354_v63 = vrot.slane %v352_v61, 7  ;;  %v359_v0 = vrot.slane %v351_v60, 1  ;;  %v360_v1 = vrot.slane %v352_v61, 1  ;;  %v657_v60 = vld [vmem:[%s1780_s5 + $0x30] sm:$0xff] }
 0x37d   :  { %v356_v2 = vsel %vm61_vm2, %v354_v63, %v353_v62  ;;  %v361_v3 = vsel %vm68_vm0, %v359_v0, %v360_v1  ;;  %v362_v37 = vsel %vm68_vm0, %v360_v1, %v359_v0  ;;  %v355_v40 = vsel %vm61_vm2, %v353_v62, %v354_v63  ;;  %v659_v0 = vld [vmem:[%s1780_s5 + $0x40] sm:$0xff]  ;;  %v660_v1 = vld [vmem:[%s1780_s5 + $0x48] sm:$0xff] }
 0x37e   :  { %818 = vmatmul.mubr.msk.f32.vlgmr.msra.gmra.mrb[4].mxu0 %vm1456_vm3, %v356_v2  ;;  %1029 = vmatprep.mubr.msk.f32.mxu1 %vm1406_vm1, %v361_v3 }
 0x37f   :  { %491 = vmatprep.mubr.f32.mxu0 %v352_v61  ;;  %1030 = vmatmul.mubr.msk.f32.vlgmr.msra.gmra.mrb[2].mxu1 %vm1462_vm4, %v362_v37  ;;  %v658_v61 = vld [vmem:[%s1780_s5 + $0x38] sm:$0xff]  ;;  %v1211_v37 = vpack.c.bf16 %v660_v1, %v659_v0 }
 0x380   :  { %1198 = vmatpush3.bf16.msra.mxu0 %v1195_v50  ;;  %v1207_v63 = vpack.c.bf16 %v658_v61, %v657_v60 }
 0x381   :  { %1200 = vmatprep.subr.bf16.mxu0 %v1199_v54 }
 0x382   :  { %820 = vmatmul.mubr.msk.f32.gmra.mrb[6].mxu0 %vm1471_vm5, %v355_v40  ;;  %v661_v40 = vld [vmem:[%s1780_s5 + $0x50] sm:$0xff] }
 0x384   :  { %1202 = vmatpush3.bf16.msra.mxu0 %v1199_v54 }
 0x385   :  { %1204 = vmatprep.subr.bf16.mxu0 %v1203_v58 }
 0x388   :  { %1206 = vmatpush3.bf16.msra.mxu0 %v1203_v58 }
 0x389   :  { %1208 = vmatprep.subr.bf16.mxu0 %v1207_v63 }
 0x38c   :  { %1210 = vmatpush3.bf16.msra.mxu0 %v1207_v63 }
 0x38d   :  { %1212 = vmatprep.subr.bf16.mxu0 %v1211_v37 }
 0x390   :  { %1214 = vmatpush3.bf16.msra.mxu0 %v1211_v37 }
 0x451   :  { %v920_v4 = vpop.f32.mrb[4].mxu0 }
 0x452   :  { %v921_v5 = vpop.f32.mrb[5].mxu0  ;;  %v1031_v6 = vpop.f32.mrb[2].mxu1 }
 0x453   :  { %v922_v7 = vadd.f32 %v921_v5, %v920_v4  ;;  %v563_v59 = vpop.f32.mrb[3].mxu1  ;;  %v662_v4 = vld [vmem:[%s1780_s5 + $0x58] sm:$0xff] }
 0x454   :  { %v1215_v5 = vpack.c.bf16 %v662_v4, %v661_v40 }
 0x455   :  { %v489_v8 = vadd.f32 %v922_v7, %v816_v22  ;;  %v923_v9 = vpop.f32.mrb[6].mxu0 }
 0x456   :  { %v924_v10 = vpop.f32.mrb[7].mxu0  ;;  %1216 = vmatprep.subr.bf16.mxu0 %v1215_v5 }
 0x457   :  { %v1686_v24 = vadd.f32 %v563_v59, %v489_v8  ;;  %v925_v11 = vadd.f32 %v924_v10, %v923_v9  ;;  %v665_v59 = vld [vmem:[%s1780_s5 + $0x70] sm:$0xff]  ;;  %v666_v8 = vld [vmem:[%s1780_s5 + $0x78] sm:$0xff]  ;;  %1218 = vmatpush3.bf16.msra.mxu0 %v1215_v5 }
 0x458   :  { %v1223_v9 = vpack.c.bf16 %v666_v8, %v665_v59 }
 0x459   :  { %v494_v38 = vadd.f32 %v925_v11, %v816_v22  ;;  %v579_v26 = vmul.f32 %v1686_v24, %v1686_v24  ;;  %v664_v22 = vld [vmem:[%s1780_s5 + $0x68] sm:$0xff] }
 0x45b   :  { %v1688_v12 = vadd.f32 %v1031_v6, %v494_v38  ;;  %v663_v6 = vld [vmem:[%s1780_s5 + $0x60] sm:$0xff] }
 0x45c   :  { %v1219_v7 = vpack.c.bf16 %v664_v22, %v663_v6 }
 0x45d   :  { %v572_v13 = vadd.f32 %v1688_v12, %v1686_v24  ;;  %v580_v14 = vmul.f32 %v1688_v12, %v1688_v12 }
 0x45e   :  { %1220 = vmatprep.subr.bf16.mxu0 %v1219_v7 }
 0x45f   :  { %v573_v15 = vrot.slane %v572_v13, 4  ;;  %v581_v16 = vadd.f32 %v580_v14, %v579_v26  ;;  %1222 = vmatpush3.bf16.msra.mxu0 %v1219_v7 }
 0x460   :  { %1224 = vmatprep.subr.bf16.mxu0 %v1223_v9 }
 0x461   :  { %v574_v17 = vadd.f32 %v573_v15, %v572_v13  ;;  %v582_v18 = vrot.slane %v581_v16, 4 }
 0x463   :  { %v575_v19 = vrot.slane %v574_v17, 2  ;;  %v583_v20 = vadd.f32 %v582_v18, %v581_v16  ;;  %1226 = vmatpush3.bf16.msra.mxu0 %v1223_v9  ;;  %v825_v18 = vld [vmem:[%s1778_s3 + $0x1] sm:$0x1] }
 0x465   :  { %v576_v21 = vadd.f32 %v575_v19, %v574_v17  ;;  %v584_v23 = vrot.slane %v583_v20, 2 }
 0x467   :  { %v577_v25 = vrot.slane %v576_v21, 1  ;;  %v585_v27 = vadd.f32 %v584_v23, %v583_v20 }
 0x469   :  { %v578_v28 = vadd.f32 %v577_v25, %v576_v21  ;;  %v586_v29 = vrot.slane %v585_v27, 1  ;;  %v826_v21 = vld [vmem:[%s1779_s4 + $0x1] sm:$0x1] }
 0x46b   :  { %588 = vrot.lane.b32.xlu0 %v578_v28, %s1236_s9  ;;  %v587_v31 = vadd.f32 %v586_v29, %v585_v27 }
 0x46d   :  { %591 = vrot.lane.b32.xlu1 %v587_v31, %s1236_s9 }
 0x4dd   :  { %v589_v32 = vpop.permute.xlu0 %588 }
 0x4de   :  { %v590_v33 = vadd.f32 %v589_v32, %v578_v28 }
 0x4df   :  { %v592_v34 = vpop.permute.xlu1 %591 }
 0x4e0   :  { %v593_v35 = vadd.f32 %v592_v34, %v587_v31  ;;  %594 = vrot.lane.b32.xlu0 %v590_v33, %s1237_s10 }
 0x4e2   :  { %597 = vrot.lane.b32.xlu1 %v593_v35, %s1237_s10 }
 0x552   :  { %v595_v36 = vpop.permute.xlu0 %594 }
 0x553   :  { %v596_v39 = vadd.f32 %v595_v36, %v590_v33 }
 0x554   :  { %v598_v41 = vpop.permute.xlu1 %597 }
 0x555   :  { %v599_v42 = vadd.f32 %v598_v41, %v593_v35  ;;  %600 = vrot.lane.b32.xlu0 %v596_v39, %s1238_s11  ;;  %v827_v41 = vld [vmem:[%s1781_s6] ss:$0 sm:$0xff] }
 0x557   :  { %603 = vrot.lane.b32.xlu1 %v599_v42, %s1238_s11 }
 0x5c7   :  { %v601_v43 = vpop.permute.xlu0 %600 }
 0x5c8   :  { %v602_v44 = vadd.f32 %v601_v43, %v596_v39 }
 0x5c9   :  { %v604_v45 = vpop.permute.xlu1 %603 }
 0x5ca   :  { %v605_v47 = vadd.f32 %v604_v45, %v599_v42  ;;  %606 = vrot.lane.b32.xlu0 %v602_v44, %s1239_s12 }
 0x5cc   :  { %609 = vrot.lane.b32.xlu1 %v605_v47, %s1239_s12 }
 0x63c   :  { %v607_v57 = vpop.permute.xlu0 %606 }
 0x63d   :  { %v608_v62 = vadd.f32 %v607_v57, %v602_v44 }
 0x63e   :  { %v610_v2 = vpop.permute.xlu1 %609 }
 0x63f   :  { %v611_v3 = vadd.f32 %v610_v2, %v605_v47  ;;  %612 = vrot.lane.b32.xlu0 %v608_v62, %s1240_s27 }
 0x641   :  { %615 = vrot.lane.b32.xlu1 %v611_v3, %s1240_s27 }
 0x6b1   :  { %v613_v10 = vpop.permute.xlu0 %612 }
 0x6b2   :  { %v614_v11 = vadd.f32 %v613_v10, %v608_v62 }
 0x6b3   :  { %v616_v38 = vpop.permute.xlu1 %615 }
 0x6b4   :  { %v618_v26 = vmul.f32 0.001953125, %v614_v11  ;;  %v617_v13 = vadd.f32 %v616_v38, %v611_v3 }
 0x6b6   :  { %v620_v14 = vmul.f32 %v618_v26, %v618_v26  ;;  %v619_v15 = vmul.f32 0.001953125, %v617_v13 }
 0x6b8   :  { %v621_v16 = vsub.f32 %v619_v15, %v620_v14 }
 0x6ba   :  { %v624_v17 = vadd.f32 1e-05, %v621_v16 }
 0x6bc   :  { %1234 = vrsqrt.f32 %v624_v17 }
 0x6c6   :  { %v1235_v19 = vpop.eup %1234 }
 0x6c7   :  { %v626_v20 = vmul.f32 %v1235_v19, %v825_v18 }
 0x6c9   :  { %v629_v23 = vmul.f32 %v626_v20, %v618_v26  ;;  %v635_v25 = vrot.slane %v626_v20, %v1658_v46 }
 0x6cb   :  { %v630_v27 = vsub.f32 %v826_v21, %v629_v23  ;;  %v637_v28 = vmul.f32 %v635_v25, %v1686_v24  ;;  %v638_v29 = vmul.f32 %v635_v25, %v1688_v12 }
 0x6cd   :  { %v643_v31 = vrot.slane %v630_v27, %v1658_v46 }
 0x6cf   :  { %v645_v32 = vadd.f32 %v643_v31, %v637_v28  ;;  %v646_v33 = vadd.f32 %v643_v31, %v638_v29 }
 0x6d1   :  { %v647_v34 = vmax.f32 %v645_v32, 0.0  ;;  %v648_v35 = vmax.f32 %v646_v33, 0.0 }
 0x6d3   :  { %v649_v36 = vadd.f32 %v647_v34, %v1382_v48  ;;  %v650_v39 = vadd.f32 %v648_v35, %v1394_v53 }
 0x6d5   :  { %1064 = vmatprep.mubr.f32.mxu0 %v649_v36 }
 0x6d6   :  { %1065 = vmatmul.mubr.f32.vlgmr.msra.gmra.mrb[8].mxu0 %v650_v39 }
 0x7a9   :  { %v1066_v42 = vpop.f32.mrb[8].mxu0 }
 0x7aa   :  { %v746_v24 = vadd.f32 %v1066_v42, %v827_v41  ;;  %v740_v43 = vpop.f32.mrb[9].mxu0 }
 0x7ab   :  { %v741_v12 = vadd.f32 %v827_v41, %v740_v43 }
 0x7ac   :  { %v750_v46 = vmax.f32 %v746_v24, 0.0 }
 0x7ad   :  { %v749_v44 = vmax.f32 %v741_v12, 0.0 }
 0x7ae   :  { %753 = vst.msk [vmem:[%s1782_s7 + $0x8] sm:$0xff] %vm751_vm6, %v750_v46 }
 0x7af   :  { %752 = vst.msk [vmem:[%s1782_s7] sm:$0xff] %vm751_vm6, %v749_v44 }

</bundles_post_ra>
